<compile_context>
chip_gen: v5e
topology: v5e:2x2
jax: 0.10.0
libtpu: 0.0.40
codegen_flags: <defaults>
</compile_context>

<pallas_src>
import functools

import jax
import jax.numpy as jnp
from jax.experimental import pallas as pl
from jax.experimental.pallas import tpu as pltpu


def _series_decomp_kernel(kernel_size, x_ref, res_ref, mean_ref, pad_ref):
    """One (batch-block, channel-block) tile.

    x_ref/res_ref/mean_ref: (Bb, L, Cb).
    pad_ref: (Bb, x_off + L + pad_end, Cb) replicate-padded halo scratch (input dtype),
    with x placed at the sublane-aligned row offset x_off.
    """
    Bb, L, Cb = x_ref.shape
    K = kernel_size
    pad_front = K - 1 - (K - 1) // 2     # matches the PyTorch front repeat count
    pad_end = (K - 1) // 2               # matches the PyTorch end repeat count
    x_off = ((pad_front + 7) // 8) * 8   # sublane-aligned row where x starts in the halo
    base = x_off - pad_front             # row where the padded sequence xp starts

    x = x_ref[...]

    # --- fill the replicate-padded halo once; the big x store is (8,128)-aligned ---
    pad_ref[:, x_off:x_off + L, :] = x
    if pad_front > 0:
        pad_ref[:, base:x_off, :] = jnp.broadcast_to(x[:, 0:1, :], (Bb, pad_front, Cb))
    if pad_end > 0:
        pad_ref[:, x_off + L:x_off + L + pad_end, :] = jnp.broadcast_to(
            x[:, L - 1:L, :], (Bb, pad_end, Cb))

    # --- moving average: K static shifted taps of the halo, f32 accumulation ---
    acc = jnp.zeros((Bb, L, Cb), jnp.float32)
    for j in range(K):                   # K small & static -> unrolled, LLO-visible
        acc = acc + pad_ref[:, base + j:base + j + L, :].astype(jnp.float32)
    mean = (acc * (1.0 / K)).astype(mean_ref.dtype)

    mean_ref[...] = mean
    # Subtract the dtype-rounded mean (matches PyTorch: res = x - moving_mean in model dtype).
    res_ref[...] = (x - mean).astype(res_ref.dtype)


def series_decomp(x, kernel_size):
    """x: (B, L, C) as in the PyTorch module. Returns (res, moving_mean), both (B, L, C)."""
    B, L, C = x.shape
    dtype = x.dtype
    dsize = jnp.dtype(dtype).itemsize
    K = kernel_size

    # Lane-dense channels: pad C up to a multiple of 128 (padded channels are independent
    # of the real ones and are sliced off afterwards), so all stores are unmasked vst.
    # TODO(synk): for tiny C (e.g. 7) a layout putting L on the lane axis would avoid the
    # wasted lanes; zero-padding keeps this correct and store-friendly.
    C_pad = ((C + 127) // 128) * 128
    x_in = jnp.pad(x, ((0, 0), (0, 0), (0, C_pad - C))) if C_pad != C else x

    block_c = 128
    for cand in (1024, 512, 256, 128):
        if C_pad % cand == 0:
            block_c = cand
            break
    n_c = C_pad // block_c

    pad_front = K - 1 - (K - 1) // 2
    pad_end = (K - 1) // 2
    x_off = ((pad_front + 7) // 8) * 8
    halo_rows = x_off + L + pad_end

    # Batch-block so each grid step moves >= ~1 MiB of x (amortizes per-step overhead for
    # this pure-bandwidth kernel) while keeping per-step VMEM (x + res + mean, each
    # double-buffered, plus the halo scratch) comfortably inside v7x's 64 MiB VMEM.
    per_b_x = L * block_c * dsize
    per_b_vmem = 2 * per_b_x + 2 * 2 * per_b_x + halo_rows * block_c * dsize
    divisors = [d for d in range(1, B + 1) if B % d == 0]
    block_b = divisors[-1]
    for d in divisors:
        if d * per_b_x >= (1 << 20):
            block_b = d
            break
    while block_b > 1 and block_b * per_b_vmem > (28 << 20):
        block_b = [d for d in divisors if d < block_b][-1]
    n_b = B // block_b

    est_vmem = block_b * per_b_vmem
    vmem_limit = int(min(48 << 20, max(32 << 20, est_vmem * 5 // 4)))

    kernel = functools.partial(_series_decomp_kernel, K)
    tile_map = lambda b, c: (b, 0, c)

    res, mean = pl.pallas_call(
        kernel,
        out_shape=(
            jax.ShapeDtypeStruct((B, L, C_pad), dtype),   # res
            jax.ShapeDtypeStruct((B, L, C_pad), dtype),   # moving_mean
        ),
        grid_spec=pltpu.PrefetchScalarGridSpec(
            num_scalar_prefetch=0,
            grid=(n_b, n_c),
            in_specs=[
                pl.BlockSpec((block_b, L, block_c), tile_map),       # x tile
            ],
            out_specs=[
                pl.BlockSpec((block_b, L, block_c), tile_map),       # res tile
                pl.BlockSpec((block_b, L, block_c), tile_map),       # mean tile
            ],
            scratch_shapes=[
                pltpu.VMEM((block_b, halo_rows, block_c), dtype),    # replicate-padded halo
            ],
        ),
        compiler_params=pltpu.CompilerParams(
            dimension_semantics=("parallel", "parallel"),
            vmem_limit_bytes=vmem_limit),
    )(x_in)

    if C_pad != C:
        res = res[:, :, :C]
        mean = mean[:, :, :C]
    return res, mean


def reference_series_decomp(x, kernel_size):
    """Plain-JAX reference of the PyTorch math (replicate pad + AvgPool1d stride 1)."""
    K = kernel_size
    pad_front = K - 1 - (K - 1) // 2
    pad_end = (K - 1) // 2
    B, L, C = x.shape
    xp = jnp.concatenate(
        [jnp.repeat(x[:, 0:1, :], pad_front, axis=1),
         x,
         jnp.repeat(x[:, -1:, :], pad_end, axis=1)],
        axis=1)
    acc = jnp.zeros((B, L, C), jnp.float32)
    for j in range(K):
        acc = acc + xp[:, j:j + L, :].astype(jnp.float32)
    mean = (acc * (1.0 / K)).astype(x.dtype)
    res = x - mean
    return res, mean


if __name__ == "__main__":
    key = jax.random.PRNGKey(0)

    # Primary: lane-dense channels, common decomposition window K=25.
    B, L, C, K = 2, 48, 128, 25
    x = jax.random.normal(key, (B, L, C), jnp.float32)
    res, mean = jax.block_until_ready(series_decomp(x, K))
    res_ref, mean_ref = reference_series_decomp(x, K)
    assert res.shape == (B, L, C) and mean.shape == (B, L, C)
    assert jnp.allclose(mean, mean_ref, atol=1e-5, rtol=1e-5), "moving_mean mismatch"
    assert jnp.allclose(res, res_ref, atol=1e-5, rtol=1e-5), "res mismatch"

    # Secondary: C not a multiple of 128 exercises the lane-padding wrapper path.
    B2, L2, C2, K2 = 2, 24, 7, 5
    x2 = jax.random.normal(jax.random.PRNGKey(0), (B2, L2, C2), jnp.float32)
    res2, mean2 = jax.block_until_ready(series_decomp(x2, K2))
    res2_ref, mean2_ref = reference_series_decomp(x2, K2)
    assert jnp.allclose(mean2, mean2_ref, atol=1e-5, rtol=1e-5), "moving_mean mismatch (C=7)"
    assert jnp.allclose(res2, res2_ref, atol=1e-5, rtol=1e-5), "res mismatch (C=7)"

    print("KERNEL_OK")
</pallas_src>

<mosaic_0001>
module attributes {stable_mosaic.version = 11 : i64} {
  func.func @_series_decomp_kernel(%arg0: i32, %arg1: i32, %arg2: memref<2x48x128xf32, #tpu.memory_space<vmem>>, %arg3: memref<2x48x128xf32, #tpu.memory_space<vmem>>, %arg4: memref<2x48x128xf32, #tpu.memory_space<vmem>>, %arg5: memref<2x76x128xf32, #tpu.memory_space<vmem>>) attributes {dimension_semantics = [#tpu.dimension_semantics<parallel>, #tpu.dimension_semantics<parallel>], iteration_bounds = array<i64: 1, 1>, scalar_prefetch = 0 : i64, scratch_operands = 1 : i64, tpu.core_type = #tpu.core_type<tc>, window_params = [{transform_indices = @transform_0, window_bounds = array<i64: 2, 48, 128>}, {transform_indices = @transform_1, window_bounds = array<i64: 2, 48, 128>}, {transform_indices = @transform_2, window_bounds = array<i64: 2, 48, 128>}]} {
    %c0 = arith.constant 0 : index
    %c0_0 = arith.constant 0 : index
    %c0_1 = arith.constant 0 : index
    %0 = vector.load %arg2[%c0, %c0_0, %c0_1] : memref<2x48x128xf32, #tpu.memory_space<vmem>>, vector<2x48x128xf32>
    %c0_2 = arith.constant 0 : index
    %c16 = arith.constant 16 : index
    %c0_3 = arith.constant 0 : index
    %1 = vector.load %arg5[%c0_2, %c16, %c0_3] : memref<2x76x128xf32, #tpu.memory_space<vmem>>, vector<2x48x128xf32>
    tpu.vector_store %arg5[%c0_2, %c16, %c0_3], %0 {strides = array<i32>} : memref<2x76x128xf32, #tpu.memory_space<vmem>>, vector<2x48x128xf32>,
    %2 = vector.extract_strided_slice %0 {offsets = [0, 0, 0], sizes = [2, 1, 128], strides = [1, 1, 1]} : vector<2x48x128xf32> to vector<2x1x128xf32>
    %3 = vector.shape_cast %2 : vector<2x1x128xf32> to vector<2x1x128xf32>
    %4 = vector.broadcast %3 : vector<2x1x128xf32> to vector<2x12x128xf32>
    %c0_4 = arith.constant 0 : index
    %c4 = arith.constant 4 : index
    %c0_5 = arith.constant 0 : index
    %5 = vector.load %arg5[%c0_4, %c4, %c0_5] : memref<2x76x128xf32, #tpu.memory_space<vmem>>, vector<2x12x128xf32>
    tpu.vector_store %arg5[%c0_4, %c4, %c0_5], %4 {strides = array<i32>} : memref<2x76x128xf32, #tpu.memory_space<vmem>>, vector<2x12x128xf32>,
    %6 = vector.extract_strided_slice %0 {offsets = [0, 47, 0], sizes = [2, 1, 128], strides = [1, 1, 1]} : vector<2x48x128xf32> to vector<2x1x128xf32>
    %7 = vector.shape_cast %6 : vector<2x1x128xf32> to vector<2x1x128xf32>
    %8 = vector.broadcast %7 : vector<2x1x128xf32> to vector<2x12x128xf32>
    %c0_6 = arith.constant 0 : index
    %c64 = arith.constant 64 : index
    %c0_7 = arith.constant 0 : index
    %9 = vector.load %arg5[%c0_6, %c64, %c0_7] : memref<2x76x128xf32, #tpu.memory_space<vmem>>, vector<2x12x128xf32>
    tpu.vector_store %arg5[%c0_6, %c64, %c0_7], %8 {strides = array<i32>} : memref<2x76x128xf32, #tpu.memory_space<vmem>>, vector<2x12x128xf32>,
    %cst = arith.constant 0.000000e+00 : f32
    %10 = vector.broadcast %cst : f32 to vector<2x48x128xf32>
    %c0_8 = arith.constant 0 : index
    %c4_9 = arith.constant 4 : index
    %c0_10 = arith.constant 0 : index
    %11 = vector.load %arg5[%c0_8, %c4_9, %c0_10] : memref<2x76x128xf32, #tpu.memory_space<vmem>>, vector<2x48x128xf32>
    %12 = arith.addf %10, %11 : vector<2x48x128xf32>
    %c0_11 = arith.constant 0 : index
    %c5 = arith.constant 5 : index
    %c0_12 = arith.constant 0 : index
    %13 = vector.load %arg5[%c0_11, %c5, %c0_12] : memref<2x76x128xf32, #tpu.memory_space<vmem>>, vector<2x48x128xf32>
    %14 = arith.addf %12, %13 : vector<2x48x128xf32>
    %c0_13 = arith.constant 0 : index
    %c6 = arith.constant 6 : index
    %c0_14 = arith.constant 0 : index
    %15 = vector.load %arg5[%c0_13, %c6, %c0_14] : memref<2x76x128xf32, #tpu.memory_space<vmem>>, vector<2x48x128xf32>
    %16 = arith.addf %14, %15 : vector<2x48x128xf32>
    %c0_15 = arith.constant 0 : index
    %c7 = arith.constant 7 : index
    %c0_16 = arith.constant 0 : index
    %17 = vector.load %arg5[%c0_15, %c7, %c0_16] : memref<2x76x128xf32, #tpu.memory_space<vmem>>, vector<2x48x128xf32>
    %18 = arith.addf %16, %17 : vector<2x48x128xf32>
    %c0_17 = arith.constant 0 : index
    %c8 = arith.constant 8 : index
    %c0_18 = arith.constant 0 : index
    %19 = vector.load %arg5[%c0_17, %c8, %c0_18] : memref<2x76x128xf32, #tpu.memory_space<vmem>>, vector<2x48x128xf32>
    %20 = arith.addf %18, %19 : vector<2x48x128xf32>
    %c0_19 = arith.constant 0 : index
    %c9 = arith.constant 9 : index
    %c0_20 = arith.constant 0 : index
    %21 = vector.load %arg5[%c0_19, %c9, %c0_20] : memref<2x76x128xf32, #tpu.memory_space<vmem>>, vector<2x48x128xf32>
    %22 = arith.addf %20, %21 : vector<2x48x128xf32>
    %c0_21 = arith.constant 0 : index
    %c10 = arith.constant 10 : index
    %c0_22 = arith.constant 0 : index
    %23 = vector.load %arg5[%c0_21, %c10, %c0_22] : memref<2x76x128xf32, #tpu.memory_space<vmem>>, vector<2x48x128xf32>
    %24 = arith.addf %22, %23 : vector<2x48x128xf32>
    %c0_23 = arith.constant 0 : index
    %c11 = arith.constant 11 : index
    %c0_24 = arith.constant 0 : index
    %25 = vector.load %arg5[%c0_23, %c11, %c0_24] : memref<2x76x128xf32, #tpu.memory_space<vmem>>, vector<2x48x128xf32>
    %26 = arith.addf %24, %25 : vector<2x48x128xf32>
    %c0_25 = arith.constant 0 : index
    %c12 = arith.constant 12 : index
    %c0_26 = arith.constant 0 : index
    %27 = vector.load %arg5[%c0_25, %c12, %c0_26] : memref<2x76x128xf32, #tpu.memory_space<vmem>>, vector<2x48x128xf32>
    %28 = arith.addf %26, %27 : vector<2x48x128xf32>
    %c0_27 = arith.constant 0 : index
    %c13 = arith.constant 13 : index
    %c0_28 = arith.constant 0 : index
    %29 = vector.load %arg5[%c0_27, %c13, %c0_28] : memref<2x76x128xf32, #tpu.memory_space<vmem>>, vector<2x48x128xf32>
    %30 = arith.addf %28, %29 : vector<2x48x128xf32>
    %c0_29 = arith.constant 0 : index
    %c14 = arith.constant 14 : index
    %c0_30 = arith.constant 0 : index
    %31 = vector.load %arg5[%c0_29, %c14, %c0_30] : memref<2x76x128xf32, #tpu.memory_space<vmem>>, vector<2x48x128xf32>
    %32 = arith.addf %30, %31 : vector<2x48x128xf32>
    %c0_31 = arith.constant 0 : index
    %c15 = arith.constant 15 : index
    %c0_32 = arith.constant 0 : index
    %33 = vector.load %arg5[%c0_31, %c15, %c0_32] : memref<2x76x128xf32, #tpu.memory_space<vmem>>, vector<2x48x128xf32>
    %34 = arith.addf %32, %33 : vector<2x48x128xf32>
    %c0_33 = arith.constant 0 : index
    %c16_34 = arith.constant 16 : index
    %c0_35 = arith.constant 0 : index
    %35 = vector.load %arg5[%c0_33, %c16_34, %c0_35] : memref<2x76x128xf32, #tpu.memory_space<vmem>>, vector<2x48x128xf32>
    %36 = arith.addf %34, %35 : vector<2x48x128xf32>
    %c0_36 = arith.constant 0 : index
    %c17 = arith.constant 17 : index
    %c0_37 = arith.constant 0 : index
    %37 = vector.load %arg5[%c0_36, %c17, %c0_37] : memref<2x76x128xf32, #tpu.memory_space<vmem>>, vector<2x48x128xf32>
    %38 = arith.addf %36, %37 : vector<2x48x128xf32>
    %c0_38 = arith.constant 0 : index
    %c18 = arith.constant 18 : index
    %c0_39 = arith.constant 0 : index
    %39 = vector.load %arg5[%c0_38, %c18, %c0_39] : memref<2x76x128xf32, #tpu.memory_space<vmem>>, vector<2x48x128xf32>
    %40 = arith.addf %38, %39 : vector<2x48x128xf32>
    %c0_40 = arith.constant 0 : index
    %c19 = arith.constant 19 : index
    %c0_41 = arith.constant 0 : index
    %41 = vector.load %arg5[%c0_40, %c19, %c0_41] : memref<2x76x128xf32, #tpu.memory_space<vmem>>, vector<2x48x128xf32>
    %42 = arith.addf %40, %41 : vector<2x48x128xf32>
    %c0_42 = arith.constant 0 : index
    %c20 = arith.constant 20 : index
    %c0_43 = arith.constant 0 : index
    %43 = vector.load %arg5[%c0_42, %c20, %c0_43] : memref<2x76x128xf32, #tpu.memory_space<vmem>>, vector<2x48x128xf32>
    %44 = arith.addf %42, %43 : vector<2x48x128xf32>
    %c0_44 = arith.constant 0 : index
    %c21 = arith.constant 21 : index
    %c0_45 = arith.constant 0 : index
    %45 = vector.load %arg5[%c0_44, %c21, %c0_45] : memref<2x76x128xf32, #tpu.memory_space<vmem>>, vector<2x48x128xf32>
    %46 = arith.addf %44, %45 : vector<2x48x128xf32>
    %c0_46 = arith.constant 0 : index
    %c22 = arith.constant 22 : index
    %c0_47 = arith.constant 0 : index
    %47 = vector.load %arg5[%c0_46, %c22, %c0_47] : memref<2x76x128xf32, #tpu.memory_space<vmem>>, vector<2x48x128xf32>
    %48 = arith.addf %46, %47 : vector<2x48x128xf32>
    %c0_48 = arith.constant 0 : index
    %c23 = arith.constant 23 : index
    %c0_49 = arith.constant 0 : index
    %49 = vector.load %arg5[%c0_48, %c23, %c0_49] : memref<2x76x128xf32, #tpu.memory_space<vmem>>, vector<2x48x128xf32>
    %50 = arith.addf %48, %49 : vector<2x48x128xf32>
    %c0_50 = arith.constant 0 : index
    %c24 = arith.constant 24 : index
    %c0_51 = arith.constant 0 : index
    %51 = vector.load %arg5[%c0_50, %c24, %c0_51] : memref<2x76x128xf32, #tpu.memory_space<vmem>>, vector<2x48x128xf32>
    %52 = arith.addf %50, %51 : vector<2x48x128xf32>
    %c0_52 = arith.constant 0 : index
    %c25 = arith.constant 25 : index
    %c0_53 = arith.constant 0 : index
    %53 = vector.load %arg5[%c0_52, %c25, %c0_53] : memref<2x76x128xf32, #tpu.memory_space<vmem>>, vector<2x48x128xf32>
    %54 = arith.addf %52, %53 : vector<2x48x128xf32>
    %c0_54 = arith.constant 0 : index
    %c26 = arith.constant 26 : index
    %c0_55 = arith.constant 0 : index
    %55 = vector.load %arg5[%c0_54, %c26, %c0_55] : memref<2x76x128xf32, #tpu.memory_space<vmem>>, vector<2x48x128xf32>
    %56 = arith.addf %54, %55 : vector<2x48x128xf32>
    %c0_56 = arith.constant 0 : index
    %c27 = arith.constant 27 : index
    %c0_57 = arith.constant 0 : index
    %57 = vector.load %arg5[%c0_56, %c27, %c0_57] : memref<2x76x128xf32, #tpu.memory_space<vmem>>, vector<2x48x128xf32>
    %58 = arith.addf %56, %57 : vector<2x48x128xf32>
    %c0_58 = arith.constant 0 : index
    %c28 = arith.constant 28 : index
    %c0_59 = arith.constant 0 : index
    %59 = vector.load %arg5[%c0_58, %c28, %c0_59] : memref<2x76x128xf32, #tpu.memory_space<vmem>>, vector<2x48x128xf32>
    %60 = arith.addf %58, %59 : vector<2x48x128xf32>
    %cst_60 = arith.constant 4.000000e-02 : f32
    %61 = vector.broadcast %cst_60 : f32 to vector<2x48x128xf32>
    %62 = arith.mulf %60, %61 : vector<2x48x128xf32>
    %c0_61 = arith.constant 0 : index
    %c0_62 = arith.constant 0 : index
    %c0_63 = arith.constant 0 : index
    %63 = vector.load %arg4[%c0_61, %c0_62, %c0_63] : memref<2x48x128xf32, #tpu.memory_space<vmem>>, vector<2x48x128xf32>
    tpu.vector_store %arg4[%c0_61, %c0_62, %c0_63], %62 {strides = array<i32>} : memref<2x48x128xf32, #tpu.memory_space<vmem>>, vector<2x48x128xf32>,
    %64 = arith.subf %0, %62 : vector<2x48x128xf32>
    %c0_64 = arith.constant 0 : index
    %c0_65 = arith.constant 0 : index
    %c0_66 = arith.constant 0 : index
    %65 = vector.load %arg3[%c0_64, %c0_65, %c0_66] : memref<2x48x128xf32, #tpu.memory_space<vmem>>, vector<2x48x128xf32>
    tpu.vector_store %arg3[%c0_64, %c0_65, %c0_66], %64 {strides = array<i32>} : memref<2x48x128xf32, #tpu.memory_space<vmem>>, vector<2x48x128xf32>,
    return
  }
  func.func @transform_0(%arg0: i32, %arg1: i32) -> (i32, i32, i32) {
    %c0_i32 = arith.constant 0 : i32
    %c0_i32_0 = arith.constant 0 : i32
    return %arg0, %c0_i32, %arg1 : i32, i32, i32
  }
  func.func @transform_1(%arg0: i32, %arg1: i32) -> (i32, i32, i32) {
    %c0_i32 = arith.constant 0 : i32
    %c0_i32_0 = arith.constant 0 : i32
    return %arg0, %c0_i32, %arg1 : i32, i32, i32
  }
  func.func @transform_2(%arg0: i32, %arg1: i32) -> (i32, i32, i32) {
    %c0_i32 = arith.constant 0 : i32
    %c0_i32_0 = arith.constant 0 : i32
    return %arg0, %c0_i32, %arg1 : i32, i32, i32
  }
}

</mosaic_0001>

<bundles_post_ra>
// kernel: tpu_custom_call.1
= control target key start
LH: loop header
LB: loop body
LE: loop exit
PB: predicated region body
PF: predicated region fallthrough
CT: control target
= control target key end

     0   :  { %8 = vsyncpa [#allocation4], 0  ;;  %s1201_s0 = inlined_call_operand.hbm [shape: f32[2,48,128], index: 0, kind: input, shape index: {}]   ;;  %s1202_s1 = inlined_call_operand.hbm [shape: f32[2,48,128], index: 1, kind: output, shape index: {0}]   ;;  %s1203_s2 = inlined_call_operand.hbm [shape: f32[2,48,128], index: 2, kind: output, shape index: {1}]  }
   0x1   :  { %9 = vsyncpa [#allocation5], 0 }
   0x2   :  { %10 = vsyncpa [#allocation8], 0  ;;  %s15_s11 = sshll.u32 %s1201_s0, 4  ;;  %s672_s12 = smov [#allocation3]   ;;  %s16_s11 = int_to_ptr.hbm [resolvable:$true] %s15_s11 }
   0x3   :  { %s17_s13 = sshll.u32 %s672_s12, 4  ;;  %s673_s14 = smov 128   ;;  %s18_s13 = int_to_ptr.vmem [resolvable:$true] %s17_s13 }
   0x4   :  { %s674_s15 = smov 8  }
   0x5   :  { %23 = dma.hbm_to_vmem [thread:$0]  %s16_s11, 1536, %s18_s13, [#allocation4], %s673_s14, %s673_s14, %s674_s15  }
   0x6   :  { %666 = dma.done.wait [#allocation4], 1536  }
   0x7   :  { %667 = vsyncadd [#allocation4], 4294965760  ;;  %v698_v0 = vld [vmem:[#allocation3] sm:$0xff]  ;;  %v700_v1 = vld [vmem:[#allocation3 + $0x8] sm:$0xff]  ;;  %s675_s0 = smov [#allocation7]   ;;  %s571_s19 = sshll.u32 %s1203_s2, 4  ;;  %s572_s19 = int_to_ptr.hbm [resolvable:$true] %s571_s19 }
   0x8   :  { %1258 = vst [vmem:[#allocation12_spill] sm:$0xff] %v700_v1  ;;  %v702_v2 = vld [vmem:[#allocation3 + $0x10] sm:$0xff]  ;;  %v705_v3 = vld [vmem:[#allocation3 + $0x18] sm:$0xff]  ;;  %v708_v4 = vld [vmem:[#allocation3 + $0x20] sm:$0xff]  ;;  %v52_v15 = vperm.slane %v698_v0, 0  ;;  %s569_s16 = sshll.u32 %s675_s0, 4  ;;  %s570_s16 = int_to_ptr.vmem [resolvable:$true] %s569_s16 }
   0x9   :  { %1259 = vst [vmem:[#allocation13_spill] sm:$0xff] %v702_v2  ;;  %v711_v5 = vld [vmem:[#allocation3 + $0x30] sm:$0xff]  ;;  %v714_v6 = vld [vmem:[#allocation3 + $0x38] sm:$0xff]  ;;  %v717_v7 = vld [vmem:[#allocation3 + $0x40] sm:$0xff]  ;;  %s676_s20 = smov [#allocation6]   ;;  %s558_s24 = sshll.u32 %s1202_s1, 4  ;;  %s559_s24 = int_to_ptr.hbm [resolvable:$true] %s558_s24 }
   0xa   :  { %40 = vst [vmem:[#allocation2 + $0x10] sm:$0xff] %v698_v0  ;;  %v720_v8 = vld [vmem:[#allocation3 + $0x48] sm:$0xff]  ;;  %v723_v9 = vld [vmem:[#allocation3 + $0x50] sm:$0xff]  ;;  %v728_v11 = vld [vmem:[#allocation3 + $0x58] sm:$0xff]  ;;  %v751_v21 = vperm.slane %v711_v5, 0  ;;  %s556_s21 = sshll.u32 %s676_s20, 4  ;;  %s557_s21 = int_to_ptr.vmem [resolvable:$true] %s556_s21 }
   0xb   :  { %41 = vst [vmem:[#allocation2 + $0x18] sm:$0xff] %v700_v1  ;;  %v726_v10 = vld [vmem:[#allocation3 + $0x28] sm:$0xff]  ;;  %v786_v38 = vperm.slane %v728_v11, 7 }
   0xc   :  { %42 = vst [vmem:[#allocation2 + $0x20] sm:$0xff] %v702_v2  ;;  %v762_v26 = vperm.slane %v726_v10, 7 }
   0xd   :  { %43 = vst [vmem:[#allocation2 + $0x28] sm:$0xff] %v705_v3 }
   0xe   :  { %1260 = vst [vmem:[#allocation14_spill] sm:$0xff] %v714_v6 }
   0xf   :  { %44 = vst [vmem:[#allocation2 + $0x30] sm:$0xff] %v708_v4 }
  0x10   :  { %1261 = vst [vmem:[#allocation15_spill] sm:$0xff] %v717_v7 }
  0x11   :  { %46 = vst [vmem:[#allocation2 + $0x60] sm:$0xff] %v711_v5 }
  0x12   :  { %47 = vst [vmem:[#allocation2 + $0x68] sm:$0xff] %v714_v6  ;;  %v730_v12 = vld [vmem:[#allocation2 + $0x14] sm:$0xff] }
  0x13   :  { %48 = vst [vmem:[#allocation2 + $0x70] sm:$0xff] %v717_v7  ;;  %v732_v13 = vld [vmem:[#allocation2 + $0x15] sm:$0xff]  ;;  %v742_v18 = vld [vmem:[#allocation2 + $0x1d] sm:$0xff] }
  0x14   :  { %1262 = vst [vmem:[#allocation16_spill] sm:$0xff] %v730_v12  ;;  %v734_v14 = vld [vmem:[#allocation2 + $0x16] sm:$0xff]  ;;  %v102_v16 = vadd.f32 %v732_v13, %v730_v12  ;;  %v747_v20 = vld [vmem:[#allocation2 + $0x1e] sm:$0xff]  ;;  %v768_v29 = vld [vmem:[#allocation2 + $0x26] sm:$0xff] }
  0x15   :  { %1263 = vst [vmem:[#allocation17_spill] sm:$0xff] %v732_v13  ;;  %v740_v17 = vld [vmem:[#allocation2 + $0x1c] sm:$0xff]  ;;  %v757_v24 = vld [vmem:[#allocation2 + $0x24] sm:$0xff] }
  0x16   :  { %1264 = vst [vmem:[#allocation18_spill] sm:$0xff] %v734_v14  ;;  %v103_v19 = vadd.f32 %v742_v18, %v740_v17  ;;  %v126_v22 = vadd.f32 %v734_v14, %v102_v16  ;;  %v754_v23 = vld [vmem:[#allocation2 + $0x17] sm:$0xff]  ;;  %v759_v25 = vld [vmem:[#allocation2 + $0x2c] sm:$0xff]  ;;  %v797_v44 = vld [vmem:[#allocation2 + $0x1f] sm:$0xff] }
  0x17   :  { %49 = vst [vmem:[#allocation2 + $0x78] sm:$0xff] %v720_v8  ;;  %v764_v27 = vld [vmem:[#allocation2 + $0x25] sm:$0xff]  ;;  %v766_v28 = vld [vmem:[#allocation2 + $0x2d] sm:$0xff]  ;;  %v791_v41 = vld [vmem:[#allocation2 + $0x19] sm:$0xff] }
  0x18   :  { %1265 = vst [vmem:[#allocation19_spill] sm:$0xff] %v740_v17  ;;  %v150_v30 = vadd.f32 %v754_v23, %v126_v22  ;;  %v127_v31 = vadd.f32 %v747_v20, %v103_v19  ;;  %v104_v35 = vadd.f32 %v764_v27, %v757_v24  ;;  %v105_v36 = vadd.f32 %v766_v28, %v759_v25  ;;  %v795_v43 = vld [vmem:[#allocation2 + $0x2e] sm:$0xff]  ;;  %v807_v50 = vld [vmem:[#allocation2 + $0x1a] sm:$0xff] }
  0x19   :  { %1266 = vst [vmem:[#allocation20_spill] sm:$0xff] %v742_v18  ;;  %v772_v32 = vld [vmem:[#allocation2 + $0x64] sm:$0xff]  ;;  %v813_v54 = vld [vmem:[#allocation2 + $0x1b] sm:$0xff]  ;;  %v817_v56 = vld [vmem:[#allocation2 + $0x2f] sm:$0xff] }
  0x1a   :  { %50 = vst [vmem:[#allocation2 + $0x80] sm:$0xff] %v723_v9  ;;  %v774_v33 = vld [vmem:[#allocation2 + $0x65] sm:$0xff]  ;;  %v174_v39 = vadd.f32 %v150_v30, %v700_v1  ;;  %v128_v40 = vadd.f32 %v768_v29, %v104_v35  ;;  %v129_v47 = vadd.f32 %v795_v43, %v105_v36  ;;  %v151_v49 = vadd.f32 %v797_v44, %v127_v31  ;;  %v827_v16 = vld [vmem:[#allocation2 + $0x6d] sm:$0xff] }
  0x1b   :  { %1267 = vst [vmem:[#allocation21_spill] sm:$0xff] %v747_v20  ;;  %v776_v34 = vld [vmem:[#allocation2 + $0x66] sm:$0xff]  ;;  %v108_v37 = vadd.f32 %v774_v33, %v772_v32 }
  0x1c   :  { %45 = vst [vmem:[#allocation2 + $0x38] sm:$0xff] %v726_v10  ;;  %v198_v45 = vadd.f32 %v791_v41, %v174_v39  ;;  %v800_v46 = vld [vmem:[#allocation2 + $0x67] sm:$0xff]  ;;  %v175_v55 = vadd.f32 %v151_v49, %v702_v2  ;;  %v153_v62 = vadd.f32 %v817_v56, %v129_v47 }
  0x1d   :  { %1268 = vst [vmem:[#allocation22_spill] sm:$0xff] %v754_v23  ;;  %v132_v42 = vadd.f32 %v776_v34, %v108_v37  ;;  %v804_v48 = vld [vmem:[#allocation2 + $0x27] sm:$0xff] }
  0x1e   :  { %51 = vst [vmem:[#allocation2 + $0x88] sm:$0xff] %v728_v11  ;;  %v152_v52 = vadd.f32 %v804_v48, %v128_v40  ;;  %v222_v53 = vadd.f32 %v807_v50, %v198_v45  ;;  %v820_v58 = vld [vmem:[#allocation2 + $0x6c] sm:$0xff]  ;;  %v823_v61 = vld [vmem:[#allocation2 + $0x21] sm:$0xff]  ;;  %v177_v40 = vadd.f32 %v153_v62, %v708_v4  ;;  %v894_v1 = vld [vmem:[#allocation2 + $0x74] sm:$0xff] }
  0x1f   :  { %1269 = vst [vmem:[#allocation23_spill] sm:$0xff] %v757_v24  ;;  %v156_v51 = vadd.f32 %v800_v46, %v132_v42  ;;  %v829_v19 = vld [vmem:[#allocation2 + $0x69] sm:$0xff]  ;;  %v199_v31 = vadd.f32 %v823_v61, %v175_v55  ;;  %v910_v23 = vld [vmem:[#allocation2 + $0x76] sm:$0xff] }
  0x20   :  { %54 = vst [vmem:[#allocation2 + $0x4] sm:$0xff] %v52_v15  ;;  %v176_v60 = vadd.f32 %v152_v52, %v705_v3  ;;  %v246_v63 = vadd.f32 %v813_v54, %v222_v53  ;;  %v831_v30 = vld [vmem:[#allocation2 + $0x29] sm:$0xff]  ;;  %v109_v53 = vadd.f32 %v827_v16, %v820_v58 }
  0x21   :  { %1270 = vst [vmem:[#allocation24_spill] sm:$0xff] %v772_v32  ;;  %v180_v57 = vadd.f32 %v156_v51, %v714_v6  ;;  %v836_v39 = vld [vmem:[#allocation2 + $0x22] sm:$0xff]  ;;  %v840_v45 = vld [vmem:[#allocation2 + $0x6e] sm:$0xff] }
  0x22   :  { %1271 = vst [vmem:[#allocation25_spill] sm:$0xff] %v774_v33  ;;  %v200_v37 = vadd.f32 %v831_v30, %v176_v60  ;;  %v260_v42 = vadd.f32 %v246_v63, %v740_v17  ;;  %v842_v47 = vld [vmem:[#allocation2 + $0x6a] sm:$0xff]  ;;  %v223_v52 = vadd.f32 %v836_v39, %v199_v31  ;;  %v900_v33 = vld [vmem:[#allocation2 + $0x7c] sm:$0xff] }
  0x23   :  { %1272 = vst [vmem:[#allocation26_spill] sm:$0xff] %v776_v34  ;;  %v204_v35 = vadd.f32 %v829_v19, %v180_v57  ;;  %v844_v51 = vld [vmem:[#allocation2 + $0x2a] sm:$0xff]  ;;  %v865_v6 = vld [vmem:[#allocation2 + $0x32] sm:$0xff] }
  0x24   :  { %55 = vst [vmem:[#allocation2 + $0xc] sm:$0xf] %v52_v15  ;;  %v224_v60 = vadd.f32 %v844_v51, %v200_v37  ;;  %v852_v62 = vld [vmem:[#allocation2 + $0x23] sm:$0xff]  ;;  %v854_v63 = vld [vmem:[#allocation2 + $0x31] sm:$0xff] }
  0x25   :  { %56 = vst [vmem:[#allocation2 + $0x54] sm:$0xff] %v751_v21  ;;  %v228_v55 = vadd.f32 %v842_v47, %v204_v35  ;;  %v247_v31 = vadd.f32 %v852_v62, %v223_v52  ;;  %v201_v35 = vadd.f32 %v854_v63, %v177_v40  ;;  %v133_v40 = vadd.f32 %v840_v45, %v109_v53  ;;  %v994_v13 = vld [vmem:[#allocation2 + $0x82] sm:$0xff] }
  0x26   :  { %1273 = vst [vmem:[#allocation27_spill] sm:$0xff] %v786_v38 }
  0x27   :  { %57 = vst [vmem:[#allocation2 + $0x5c] sm:$0xf] %v751_v21 }
  0x28   :  { %1274 = vst [vmem:[#allocation28_spill] sm:$0xff] %v791_v41  ;;  %v261_v41 = vadd.f32 %v247_v31, %v757_v24 }
  0x29   :  { %60 = vst [vmem:[#allocation2 + $0x40] sm:$0xff] %v762_v26 }
  0x2a   :  { %1275 = vst [vmem:[#allocation29_spill] sm:$0xff] %v797_v44  ;;  %v275_v31 = vadd.f32 %v261_v41, %v764_v27 }
  0x2b   :  { %1276 = vst [vmem:[#allocation30_spill] sm:$0xff] %v800_v46  ;;  %v88_v59 = vld [vmem:[#allocation2 + $0x5] sm:$0xff]  ;;  %v867_v46 = vld [vmem:[#allocation2 + $0xd] sm:$0xff] }
  0x2c   :  { %61 = vst [vmem:[#allocation2 + $0x48] sm:$0xf] %v762_v26  ;;  %v100_v22 = vadd.f32 %v88_v59, %v52_v15  ;;  %v112_v36 = vld [vmem:[#allocation2 + $0x6] sm:$0xff]  ;;  %v289_v41 = vadd.f32 %v275_v31, %v768_v29 }
  0x2d   :  { %1277 = vst [vmem:[#allocation31_spill] sm:$0xff] %v807_v50  ;;  %v136_v57 = vld [vmem:[#allocation2 + $0x7] sm:$0xff] }
  0x2e   :  { %62 = vst [vmem:[#allocation2 + $0x90] sm:$0xff] %v786_v38  ;;  %v124_v15 = vadd.f32 %v112_v36, %v100_v22  ;;  %v94_v49 = vld [vmem:[#allocation2 + $0x55] sm:$0xff]  ;;  %v856_v22 = vld [vmem:[#allocation2 + $0x6b] sm:$0xff] }
  0x2f   :  { %1278 = vst [vmem:[#allocation32_spill] sm:$0xff] %v813_v54  ;;  %v106_v59 = vadd.f32 %v94_v49, %v751_v21  ;;  %v118_v17 = vld [vmem:[#allocation2 + $0x56] sm:$0xff]  ;;  %v274_v54 = vadd.f32 %v260_v42, %v742_v18  ;;  %v252_v21 = vadd.f32 %v856_v22, %v228_v55  ;;  %v160_v49 = vld [vmem:[#allocation2 + $0x8] sm:$0xff]  ;;  %v225_v42 = vadd.f32 %v865_v6, %v201_v35 }
  0x30   :  { %63 = vst [vmem:[#allocation2 + $0x98] sm:$0xf] %v786_v38  ;;  %v148_v36 = vadd.f32 %v136_v57, %v124_v15  ;;  %v65_v50 = vld [vmem:[#allocation2 + $0xc] sm:$0xff]  ;;  %v142_v57 = vld [vmem:[#allocation2 + $0x57] sm:$0xff] }
  0x31   :  { %1279 = vst [vmem:[#allocation33_spill] sm:$0xff] %v820_v58  ;;  %v130_v37 = vadd.f32 %v118_v17, %v106_v59  ;;  %v288_v52 = vadd.f32 %v274_v54, %v747_v20  ;;  %v266_v55 = vadd.f32 %v252_v21, %v820_v58  ;;  %v184_v17 = vld [vmem:[#allocation2 + $0x9] sm:$0xff]  ;;  %v71_v34 = vld [vmem:[#allocation2 + $0x5c] sm:$0xff]  ;;  %v883_v53 = vadd.f32 %v867_v46, %v65_v50  ;;  %v886_v58 = vld [vmem:[#allocation2 + $0x34] sm:$0xff] }
  0x32   :  { %1280 = vst [vmem:[#allocation34_spill] sm:$0xff] %v823_v61  ;;  %v172_v15 = vadd.f32 %v160_v49, %v148_v36  ;;  %v877_v36 = vld [vmem:[#allocation2 + $0x5d] sm:$0xff]  ;;  %v208_v21 = vld [vmem:[#allocation2 + $0xa] sm:$0xff] }
  0x33   :  { %1281 = vst [vmem:[#allocation35_spill] sm:$0xff] %v827_v16  ;;  %v154_v59 = vadd.f32 %v142_v57, %v130_v37  ;;  %v166_v49 = vld [vmem:[#allocation2 + $0x58] sm:$0xff]  ;;  %v302_v54 = vadd.f32 %v288_v52, %v797_v44  ;;  %v232_v37 = vld [vmem:[#allocation2 + $0xb] sm:$0xff] }
  0x34   :  { %1282 = vst [vmem:[#allocation36_spill] sm:$0xff] %v829_v19  ;;  %v858_v19 = vld [vmem:[#allocation2 + $0x2b] sm:$0xff]  ;;  %v196_v18 = vadd.f32 %v184_v17, %v172_v15  ;;  %v280_v15 = vadd.f32 %v266_v55, %v827_v16  ;;  %v190_v20 = vld [vmem:[#allocation2 + $0x59] sm:$0xff] }
  0x35   :  { %1283 = vst [vmem:[#allocation37_spill] sm:$0xff] %v836_v39  ;;  %v178_v57 = vadd.f32 %v166_v49, %v154_v59  ;;  %v316_v52 = vadd.f32 %v302_v54, %v702_v2  ;;  %v892_v44 = vld [vmem:[#allocation2 + $0x35] sm:$0xff]  ;;  %v897_v59 = vadd.f32 %v877_v36, %v71_v34  ;;  %v904_v55 = vld [vmem:[#allocation2 + $0x7d] sm:$0xff] }
  0x36   :  { %1284 = vst [vmem:[#allocation38_spill] sm:$0xff] %v840_v45  ;;  %v220_v17 = vadd.f32 %v208_v21, %v196_v18  ;;  %v902_v18 = vld [vmem:[#allocation2 + $0x75] sm:$0xff]  ;;  %v294_v31 = vadd.f32 %v280_v15, %v840_v45  ;;  %v303_v21 = vadd.f32 %v289_v41, %v804_v48 }
  0x37   :  { %1285 = vst [vmem:[#allocation39_spill] sm:$0xff] %v842_v47  ;;  %v248_v47 = vadd.f32 %v858_v19, %v224_v60  ;;  %v330_v16 = vadd.f32 %v316_v52, %v823_v61  ;;  %v110_v15 = vadd.f32 %v902_v18, %v894_v1  ;;  %v238_v41 = vld [vmem:[#allocation2 + $0x5b] sm:$0xff]  ;;  %v931_v38 = vld [vmem:[#allocation2 + $0x6f] sm:$0xff] }
  0x38   :  { %1286 = vst [vmem:[#allocation40_spill] sm:$0xff] %v852_v62  ;;  %v244_v54 = vadd.f32 %v232_v37, %v220_v17  ;;  %v111_v37 = vadd.f32 %v904_v55, %v900_v33  ;;  %v317_v52 = vadd.f32 %v303_v21, %v705_v3  ;;  %v927_v45 = vld [vmem:[#allocation2 + $0x37] sm:$0xff] }
  0x39   :  { %1287 = vst [vmem:[#allocation41_spill] sm:$0xff] %v856_v22  ;;  %v262_v60 = vadd.f32 %v248_v47, %v759_v25  ;;  %v875_v22 = vld [vmem:[#allocation2 + $0x33] sm:$0xff]  ;;  %v997_v12 = vld [vmem:[#allocation2 + $0x3c] sm:$0xff] }
  0x3a   :  { %v249_v35 = vadd.f32 %v875_v22, %v225_v42  ;;  %v921_v17 = vadd.f32 %v244_v54, %v65_v50  ;;  %1288 = vst [vmem:[#allocation42_spill] sm:$0xff] %v931_v38  ;;  %v331_v50 = vadd.f32 %v317_v52, %v831_v30 }
  0x3b   :  { %v276_v47 = vadd.f32 %v262_v60, %v766_v28  ;;  %v202_v60 = vadd.f32 %v190_v20, %v178_v57  ;;  %v912_v20 = vld [vmem:[#allocation2 + $0x7e] sm:$0xff] }
  0x3c   :  { %v263_v42 = vadd.f32 %v886_v58, %v249_v35  ;;  %v214_v35 = vld [vmem:[#allocation2 + $0x5a] sm:$0xff]  ;;  %v135_v14 = vadd.f32 %v912_v20, %v111_v37  ;;  %v308_v37 = vadd.f32 %v294_v31, %v931_v38 }
  0x3d   :  { %v290_v49 = vadd.f32 %v276_v47, %v795_v43  ;;  %v226_v57 = vadd.f32 %v214_v35, %v202_v60  ;;  %v914_v47 = vld [vmem:[#allocation2 + $0x36] sm:$0xff] }
  0x3e   :  { %v277_v2 = vadd.f32 %v892_v44, %v263_v42  ;;  %v344_v42 = vadd.f32 %v330_v16, %v836_v39  ;;  %v936_v16 = vld [vmem:[#allocation2 + $0x77] sm:$0xff]  ;;  %v322_v31 = vadd.f32 %v308_v37, %v717_v7 }
  0x3f   :  { %v304_v32 = vadd.f32 %v290_v49, %v817_v56  ;;  %v250_v60 = vadd.f32 %v238_v41, %v226_v57  ;;  %v134_v49 = vadd.f32 %v910_v23, %v110_v15  ;;  %v345_v41 = vadd.f32 %v331_v50, %v844_v51  ;;  %v965_v39 = vld [vmem:[#allocation2 + $0x3a] sm:$0xff] }
  0x40   :  { %v291_v61 = vadd.f32 %v914_v47, %v277_v2  ;;  %v358_v54 = vadd.f32 %v344_v42, %v852_v62  ;;  %v157_v2 = vadd.f32 %v931_v38, %v133_v40  ;;  %v948_v62 = vld [vmem:[#allocation2 + $0x7f] sm:$0xff]  ;;  %v968_v38 = vld [vmem:[#allocation2 + $0x72] sm:$0xff] }
  0x41   :  { %v318_v35 = vadd.f32 %v304_v32, %v708_v4  ;;  %v939_v57 = vadd.f32 %v250_v60, %v71_v34  ;;  %v158_v15 = vadd.f32 %v936_v16, %v134_v49  ;;  %v951_v34 = vld [vmem:[#allocation2 + $0x39] sm:$0xff]  ;;  %v159_v49 = vadd.f32 %v948_v62, %v135_v14  ;;  %1290 = vst [vmem:[#allocation44_spill] sm:$0xff] %v968_v38 }
  0x42   :  { %v305_v21 = vadd.f32 %v927_v45, %v291_v61  ;;  %v372_v52 = vadd.f32 %v358_v54, %v757_v24  ;;  %v181_v61 = vadd.f32 %v157_v2, %v717_v7  ;;  %v359_v50 = vadd.f32 %v345_v41, %v858_v19  ;;  %v961_v2 = vld [vmem:[#allocation2 + $0x79] sm:$0xff] }
  0x43   :  { %v332_v32 = vadd.f32 %v318_v35, %v854_v63  ;;  %v182_v60 = vadd.f32 %v158_v15, %v720_v8  ;;  %v954_v35 = vld [vmem:[#allocation2 + $0x71] sm:$0xff]  ;;  %v183_v37 = vadd.f32 %v159_v49, %v723_v9  ;;  %v981_v7 = vld [vmem:[#allocation2 + $0x3b] sm:$0xff] }
  0x44   :  { %v319_v42 = vadd.f32 %v305_v21, %v726_v10  ;;  %1289 = vst [vmem:[#allocation43_spill] sm:$0xff] %v954_v35  ;;  %v386_v54 = vadd.f32 %v372_v52, %v764_v27  ;;  %v336_v14 = vadd.f32 %v322_v31, %v954_v35  ;;  %v373_v27 = vadd.f32 %v359_v50, %v759_v25 }
  0x45   :  { %v346_v40 = vadd.f32 %v332_v32, %v865_v6  ;;  %v205_v32 = vadd.f32 %v954_v35, %v181_v61  ;;  %v206_v15 = vadd.f32 %v961_v2, %v182_v60  ;;  %v984_v35 = vld [vmem:[#allocation2 + $0x73] sm:$0xff] }
  0x46   :  { %v333_v21 = vadd.f32 %v951_v34, %v319_v42  ;;  %v400_v41 = vadd.f32 %v386_v54, %v768_v29  ;;  %v975_v42 = vld [vmem:[#allocation2 + $0x7a] sm:$0xff]  ;;  %1291 = vst [vmem:[#allocation45_spill] sm:$0xff] %v984_v35  ;;  %v350_v49 = vadd.f32 %v336_v14, %v968_v38  ;;  %v387_v50 = vadd.f32 %v373_v27, %v766_v28 }
  0x47   :  { %v360_v24 = vadd.f32 %v346_v40, %v875_v22  ;;  %v229_v61 = vadd.f32 %v968_v38, %v205_v32  ;;  %v978_v40 = vld [vmem:[#allocation2 + $0x81] sm:$0xff]  ;;  %v230_v31 = vadd.f32 %v975_v42, %v206_v15 }
  0x48   :  { %v347_v52 = vadd.f32 %v965_v39, %v333_v21  ;;  %v207_v29 = vadd.f32 %v978_v40, %v183_v37  ;;  %v414_v54 = vadd.f32 %v400_v41, %v804_v48  ;;  %v991_v32 = vld [vmem:[#allocation2 + $0x7b] sm:$0xff]  ;;  %v364_v37 = vadd.f32 %v350_v49, %v984_v35 }
  0x49   :  { %v374_v60 = vadd.f32 %v360_v24, %v886_v58  ;;  %v253_v24 = vadd.f32 %v984_v35, %v229_v61  ;;  %v254_v14 = vadd.f32 %v991_v32, %v230_v31  ;;  %v401_v27 = vadd.f32 %v387_v50, %v795_v43  ;;  %v1006_v61 = vld [vmem:[#allocation2 + $0x83] sm:$0xff] }
  0x4a   :  { %v361_v21 = vadd.f32 %v981_v7, %v347_v52  ;;  %v231_v28 = vadd.f32 %v994_v13, %v207_v29  ;;  %v428_v48 = vadd.f32 %v414_v54, %v705_v3  ;;  %v382_v38 = vld [vmem:[#allocation2 + $0x3d] sm:$0xff]  ;;  %v378_v31 = vadd.f32 %v364_v37, %v894_v1 }
  0x4b   :  { %v388_v15 = vadd.f32 %v374_v60, %v892_v44  ;;  %v267_v52 = vadd.f32 %v253_v24, %v894_v1  ;;  %v268_v60 = vadd.f32 %v254_v14, %v900_v33  ;;  %v415_v54 = vadd.f32 %v401_v27, %v817_v56  ;;  %v396_v24 = vld [vmem:[#allocation2 + $0x3e] sm:$0xff] }
  0x4c   :  { %v375_v41 = vadd.f32 %v997_v12, %v361_v21  ;;  %v255_v49 = vadd.f32 %v1006_v61, %v231_v28  ;;  %v442_v29 = vadd.f32 %v428_v48, %v831_v30  ;;  %v1015_v21 = vld [vmem:[#allocation2 + $0x84] sm:$0xff] }
  0x4d   :  { %v402_v44 = vadd.f32 %v388_v15, %v914_v47  ;;  %v281_v50 = vadd.f32 %v267_v52, %v902_v18  ;;  %v282_v47 = vadd.f32 %v268_v60, %v904_v55  ;;  %v392_v15 = vadd.f32 %v378_v31, %v902_v18  ;;  %v1024_v56 = vld [vmem:[#allocation2 + $0x85] sm:$0xff] }
  0x4e   :  { %v389_v43 = vadd.f32 %v382_v38, %v375_v41  ;;  %v269_v14 = vadd.f32 %v1015_v21, %v255_v49  ;;  %v456_v37 = vadd.f32 %v442_v29, %v844_v51  ;;  %v429_v30 = vadd.f32 %v415_v54, %v708_v4  ;;  %v410_v27 = vld [vmem:[#allocation2 + $0x3f] sm:$0xff] }
  0x4f   :  { %v416_v35 = vadd.f32 %v402_v44, %v927_v45  ;;  %v295_v38 = vadd.f32 %v281_v50, %v910_v23  ;;  %v296_v45 = vadd.f32 %v282_v47, %v912_v20  ;;  %v406_v41 = vadd.f32 %v392_v15, %v910_v23  ;;  %v1033_v31 = vld [vmem:[#allocation2 + $0x86] sm:$0xff] }
  0x50   :  { %v403_v28 = vadd.f32 %v396_v24, %v389_v43  ;;  %v283_v18 = vadd.f32 %v1024_v56, %v269_v14  ;;  %v470_v52 = vadd.f32 %v456_v37, %v858_v19  ;;  %v443_v51 = vadd.f32 %v429_v30, %v854_v63  ;;  %v1043_v50 = vld [vmem:[#allocation2 + $0x87] sm:$0xff] }
  0x51   :  { %v430_v48 = vadd.f32 %v416_v35, %v726_v10  ;;  %v309_v60 = vadd.f32 %v295_v38, %v936_v16  ;;  %v420_v35 = vadd.f32 %v406_v41, %v936_v16  ;;  %v310_v54 = vadd.f32 %v296_v45, %v948_v62  ;;  %v438_v47 = vld [vmem:[#allocation2 + $0x41] sm:$0xff]  ;;  %v1060_v41 = vld [vmem:[#allocation2 + $0x89] sm:$0xff] }
  0x52   :  { %v417_v44 = vadd.f32 %v410_v27, %v403_v28  ;;  %v297_v29 = vadd.f32 %v1033_v31, %v283_v18  ;;  %v494_v23 = vadd.f32 %v470_v52, %v759_v25  ;;  %v457_v43 = vadd.f32 %v443_v51, %v865_v6  ;;  %v452_v30 = vld [vmem:[#allocation2 + $0x42] sm:$0xff] }
  0x53   :  { %v444_v49 = vadd.f32 %v430_v48, %v951_v34  ;;  %v323_v63 = vadd.f32 %v309_v60, %v720_v8  ;;  %v434_v34 = vadd.f32 %v420_v35, %v720_v8  ;;  %v324_v16 = vadd.f32 %v310_v54, %v723_v9  ;;  %v113_v48 = vld [vmem:[#allocation2 + $0xe] sm:$0xff]  ;;  %v466_v52 = vld [vmem:[#allocation2 + $0x43] sm:$0xff] }
  0x54   :  { %v431_v19 = vadd.f32 %v417_v44, %v762_v26  ;;  %v311_v15 = vadd.f32 %v1043_v50, %v297_v29  ;;  %v1049_v14 = vmul.f32 0.04, %v494_v23  ;;  %v471_v25 = vadd.f32 %v457_v43, %v875_v22  ;;  %v137_v60 = vld [vmem:[#allocation2 + $0xf] sm:$0xff] }
  0x55   :  { %v458_v24 = vadd.f32 %v444_v49, %v965_v39  ;;  %v337_v26 = vadd.f32 %v323_v63, %v961_v2  ;;  %v448_v28 = vadd.f32 %v434_v34, %v961_v2  ;;  %v338_v39 = vadd.f32 %v324_v16, %v978_v40  ;;  %v1070_v29 = vld [vmem:[#allocation2 + $0x8a] sm:$0xff]  ;;  %v119_v16 = vld [vmem:[#allocation2 + $0x5e] sm:$0xff] }
  0x56   :  { %v445_v6 = vadd.f32 %v438_v47, %v431_v19  ;;  %v325_v38 = vadd.f32 %v311_v15, %v728_v11  ;;  %518 = vst [vmem:[#allocation7 + $0x10] sm:$0xff] %v1049_v14  ;;  %v495_v27 = vadd.f32 %v471_v25, %v886_v58  ;;  %v125_v18 = vadd.f32 %v113_v48, %v883_v53  ;;  %v485_v53 = vld [vmem:[#allocation2 + $0x44] sm:$0xff] }
  0x57   :  { %v472_v37 = vadd.f32 %v458_v24, %v981_v7  ;;  %v351_v22 = vadd.f32 %v337_v26, %v975_v42  ;;  %v462_v2 = vadd.f32 %v448_v28, %v975_v42  ;;  %v352_v51 = vadd.f32 %v338_v39, %v994_v13  ;;  %v1079_v24 = vld [vmem:[#allocation2 + $0x8b] sm:$0xff] }
  0x58   :  { %v459_v45 = vadd.f32 %v452_v30, %v445_v6  ;;  %v339_v44 = vadd.f32 %v1060_v41, %v325_v38  ;;  %v1067_v49 = vmul.f32 0.04, %v495_v27  ;;  %v149_v54 = vadd.f32 %v137_v60, %v125_v18  ;;  %v185_v6 = vld [vmem:[#allocation2 + $0x11] sm:$0xff] }
  0x59   :  { %v496_v7 = vadd.f32 %v472_v37, %v997_v12  ;;  %v365_v35 = vadd.f32 %v351_v22, %v991_v32  ;;  %v476_v12 = vadd.f32 %v462_v2, %v991_v32  ;;  %v366_v42 = vadd.f32 %v352_v51, %v1006_v61  ;;  %v1092_v28 = vld [vmem:[#allocation2 + $0x8c] sm:$0xff] }
  0x5a   :  { %v473_v58 = vadd.f32 %v466_v52, %v459_v45  ;;  %v353_v43 = vadd.f32 %v1070_v29, %v339_v44  ;;  %519 = vst [vmem:[#allocation7 + $0x18] sm:$0xff] %v1067_v49  ;;  %v173_v47 = vadd.f32 %v149_v54, %v698_v0  ;;  %v272_v34 = vadd.f32 %v921_v17, %v867_v46  ;;  %v143_v17 = vld [vmem:[#allocation2 + $0x5f] sm:$0xff]  ;;  %v209_v45 = vld [vmem:[#allocation2 + $0x12] sm:$0xff] }
  0x5b   :  { %v1072_v23 = vmul.f32 0.04, %v496_v7  ;;  %v379_v63 = vadd.f32 %v365_v35, %v900_v33  ;;  %v500_v32 = vadd.f32 %v476_v12, %v900_v33  ;;  %v380_v15 = vadd.f32 %v366_v42, %v1015_v21  ;;  %v383_v18 = vld [vmem:[#allocation2 + $0x8d] sm:$0xff]  ;;  %v191_v54 = vld [vmem:[#allocation2 + $0x61] sm:$0xff] }
  0x5c   :  { %v497_v19 = vadd.f32 %v485_v53, %v473_v58  ;;  %v367_v25 = vadd.f32 %v1079_v24, %v353_v43  ;;  %v131_v26 = vadd.f32 %v119_v16, %v897_v59  ;;  %v197_v39 = vadd.f32 %v185_v6, %v173_v47  ;;  %v397_v58 = vld [vmem:[#allocation2 + $0x8e] sm:$0xff]  ;;  %v1292_v43 = vld [vmem:[#allocation16_spill] sm:$0xff] }
  0x5d   :  { %520 = vst [vmem:[#allocation7 + $0x20] sm:$0xff] %v1072_v23  ;;  %v393_v30 = vadd.f32 %v379_v63, %v904_v55  ;;  %v286_v46 = vadd.f32 %v272_v34, %v113_v48  ;;  %v1094_v38 = vmul.f32 0.04, %v500_v32  ;;  %v394_v33 = vadd.f32 %v380_v15, %v1024_v56  ;;  %v233_v56 = vld [vmem:[#allocation2 + $0x13] sm:$0xff]  ;;  %v215_v63 = vld [vmem:[#allocation2 + $0x62] sm:$0xff] }
  0x5e   :  { %v1089_v37 = vmul.f32 0.04, %v497_v19  ;;  %v381_v27 = vadd.f32 %v1092_v28, %v367_v25  ;;  %v155_v22 = vadd.f32 %v143_v17, %v131_v26  ;;  %v221_v7 = vadd.f32 %v209_v45, %v197_v39  ;;  %v411_v42 = vld [vmem:[#allocation2 + $0x8f] sm:$0xff] }
  0x5f   :  { %v407_v59 = vadd.f32 %v393_v30, %v912_v20  ;;  %v300_v55 = vadd.f32 %v286_v46, %v137_v60  ;;  %v278_v52 = vadd.f32 %v939_v57, %v877_v36  ;;  %524 = vst [vmem:[#allocation7 + $0x40] sm:$0xff] %v1094_v38  ;;  %v408_v2 = vadd.f32 %v394_v33, %v1033_v31  ;;  %v1293_v25 = vld [vmem:[#allocation17_spill] sm:$0xff]  ;;  %v1294_v46 = vld [vmem:[#allocation27_spill] sm:$0xff] }
  0x60   :  { %521 = vst [vmem:[#allocation7 + $0x28] sm:$0xff] %v1089_v37  ;;  %v395_v48 = vadd.f32 %v383_v18, %v381_v27  ;;  %v179_v51 = vadd.f32 %v155_v22, %v711_v5  ;;  %v245_v35 = vadd.f32 %v233_v56, %v221_v7  ;;  %v239_v30 = vld [vmem:[#allocation2 + $0x63] sm:$0xff]  ;;  %v1295_v22 = vld [vmem:[#allocation18_spill] sm:$0xff] }
  0x61   :  { %v421_v44 = vadd.f32 %v407_v59, %v948_v62  ;;  %v314_v20 = vadd.f32 %v300_v55, %v698_v0  ;;  %v292_v53 = vadd.f32 %v278_v52, %v119_v16  ;;  %v422_v12 = vadd.f32 %v408_v2, %v1043_v50  ;;  %v1296_v52 = vld [vmem:[#allocation24_spill] sm:$0xff]  ;;  %v453_v2 = vld [vmem:[#allocation2 + $0x92] sm:$0xff] }
  0x62   :  { %v409_v60 = vadd.f32 %v397_v58, %v395_v48  ;;  %v203_v36 = vadd.f32 %v191_v54, %v179_v51  ;;  %v259_v31 = vadd.f32 %v245_v35, %v1292_v43  ;;  %v1297_v51 = vld [vmem:[#allocation22_spill] sm:$0xff] }
  0x63   :  { %v435_v57 = vadd.f32 %v421_v44, %v723_v9  ;;  %v328_v19 = vadd.f32 %v314_v20, %v185_v6  ;;  %v306_v47 = vadd.f32 %v292_v53, %v143_v17  ;;  %v436_v62 = vadd.f32 %v422_v12, %v728_v11  ;;  %v439_v17 = vld [vmem:[#allocation2 + $0x91] sm:$0xff]  ;;  %v1298_v20 = vld [vmem:[#allocation25_spill] sm:$0xff] }
  0x64   :  { %v423_v34 = vadd.f32 %v411_v42, %v409_v60  ;;  %v227_v32 = vadd.f32 %v215_v63, %v203_v36  ;;  %v273_v16 = vadd.f32 %v259_v31, %v1293_v25  ;;  %v467_v60 = vld [vmem:[#allocation2 + $0x93] sm:$0xff] }
  0x65   :  { %v449_v15 = vadd.f32 %v435_v57, %v978_v40  ;;  %v342_v26 = vadd.f32 %v328_v19, %v209_v45  ;;  %v320_v50 = vadd.f32 %v306_v47, %v711_v5  ;;  %v450_v39 = vadd.f32 %v436_v62, %v1060_v41  ;;  %v1301_v31 = vld [vmem:[#allocation26_spill] sm:$0xff] }
  0x66   :  { %v437_v33 = vadd.f32 %v423_v34, %v1294_v46  ;;  %v251_v27 = vadd.f32 %v239_v30, %v227_v32  ;;  %v287_v59 = vadd.f32 %v273_v16, %v1295_v22  ;;  %v491_v47 = vld [vmem:[#allocation2 + $0x94] sm:$0xff] }
  0x67   :  { %v463_v6 = vadd.f32 %v449_v15, %v994_v13  ;;  %v356_v18 = vadd.f32 %v342_v26, %v233_v56  ;;  %v334_v7 = vadd.f32 %v320_v50, %v191_v54  ;;  %v464_v40 = vadd.f32 %v450_v39, %v1070_v29  ;;  %v1299_v56 = vld [vmem:[#allocation13_spill] sm:$0xff]  ;;  %v1305_v46 = vld [vmem:[#allocation14_spill] sm:$0xff] }
  0x68   :  { %v451_v55 = vadd.f32 %v439_v17, %v437_v33  ;;  %v265_v45 = vadd.f32 %v251_v27, %v1296_v52  ;;  %v301_v44 = vadd.f32 %v287_v59, %v1297_v51  ;;  %v530_v54 = vsub.f32 %v1299_v56, %v1049_v14  ;;  %v1306_v27 = vld [vmem:[#allocation15_spill] sm:$0xff] }
  0x69   :  { %v477_v48 = vadd.f32 %v463_v6, %v1006_v61  ;;  %v370_v41 = vadd.f32 %v356_v18, %v1292_v43  ;;  %v348_v58 = vadd.f32 %v334_v7, %v215_v63  ;;  %v478_v13 = vadd.f32 %v464_v40, %v1079_v24  ;;  %v1300_v61 = vld [vmem:[#allocation12_spill] sm:$0xff]  ;;  %v1309_v40 = vld [vmem:[#allocation19_spill] sm:$0xff] }
  0x6a   :  { %v465_v35 = vadd.f32 %v453_v2, %v451_v55  ;;  %v279_v53 = vadd.f32 %v265_v45, %v1298_v20  ;;  %v315_v36 = vadd.f32 %v301_v44, %v1300_v61  ;;  %542 = vst [vmem:[#allocation6 + $0x10] sm:$0xff] %v530_v54  ;;  %v531_v24 = vsub.f32 %v705_v3, %v1067_v49  ;;  %v1304_v3 = vld [vmem:[#allocation31_spill] sm:$0xff]  ;;  %v1308_v18 = vld [vmem:[#allocation36_spill] sm:$0xff] }
  0x6b   :  { %v501_v29 = vadd.f32 %v477_v48, %v1015_v21  ;;  %v384_v12 = vadd.f32 %v370_v41, %v1293_v25  ;;  %v362_v57 = vadd.f32 %v348_v58, %v239_v30  ;;  %v502_v42 = vadd.f32 %v478_v13, %v1092_v28  ;;  %v1302_v21 = vld [vmem:[#allocation28_spill] sm:$0xff]  ;;  %v1303_v25 = vld [vmem:[#allocation30_spill] sm:$0xff]  ;;  %v1310_v45 = vld [vmem:[#allocation39_spill] sm:$0xff] }
  0x6c   :  { %v479_v43 = vadd.f32 %v467_v60, %v465_v35  ;;  %v293_v19 = vadd.f32 %v279_v53, %v1301_v31  ;;  %v329_v62 = vadd.f32 %v315_v36, %v1302_v21  ;;  %543 = vst [vmem:[#allocation6 + $0x18] sm:$0xff] %v531_v24  ;;  %v532_v28 = vsub.f32 %v708_v4, %v1072_v23  ;;  %v1307_v4 = vld [vmem:[#allocation32_spill] sm:$0xff]  ;;  %v1313_v13 = vld [vmem:[#allocation21_spill] sm:$0xff]  ;;  %v1316_v36 = vld [vmem:[#allocation35_spill] sm:$0xff] }
  0x6d   :  { %v513_v63 = vmul.f32 0.04, %v501_v29  ;;  %v398_v14 = vadd.f32 %v384_v12, %v1295_v22  ;;  %v376_v34 = vadd.f32 %v362_v57, %v1296_v52  ;;  %v514_v32 = vmul.f32 0.04, %v502_v42  ;;  %v1315_v29 = vld [vmem:[#allocation29_spill] sm:$0xff] }
  0x6e   :  { %v503_v15 = vadd.f32 %v491_v47, %v479_v43  ;;  %v307_v16 = vadd.f32 %v293_v19, %v1303_v25  ;;  %v343_v49 = vadd.f32 %v329_v62, %v1304_v3  ;;  %v533_v50 = vsub.f32 %v726_v10, %v1089_v37  ;;  %544 = vst [vmem:[#allocation6 + $0x20] sm:$0xff] %v532_v28  ;;  %v1317_v19 = vld [vmem:[#allocation38_spill] sm:$0xff] }
  0x6f   :  { %525 = vst [vmem:[#allocation7 + $0x48] sm:$0xff] %v513_v63  ;;  %v412_v26 = vadd.f32 %v398_v14, %v1297_v51  ;;  %v390_v30 = vadd.f32 %v376_v34, %v1298_v20  ;;  %v536_v6 = vsub.f32 %v1306_v27, %v1094_v38  ;;  %v537_v59 = vsub.f32 %v720_v8, %v513_v63  ;;  %v1311_v8 = vld [vmem:[#allocation20_spill] sm:$0xff]  ;;  %v1318_v63 = vld [vmem:[#allocation34_spill] sm:$0xff] }
  0x70   :  { %526 = vst [vmem:[#allocation7 + $0x50] sm:$0xff] %v514_v32  ;;  %v515_v39 = vmul.f32 0.04, %v503_v15  ;;  %v321_v33 = vadd.f32 %v307_v16, %v1305_v46  ;;  %v357_v23 = vadd.f32 %v343_v49, %v1307_v4  ;;  %v538_v10 = vsub.f32 %v723_v9, %v514_v32  ;;  %v1312_v9 = vld [vmem:[#allocation41_spill] sm:$0xff]  ;;  %v1319_v62 = vld [vmem:[#allocation42_spill] sm:$0xff] }
  0x71   :  { %v426_v17 = vadd.f32 %v412_v26, %v1300_v61  ;;  %v404_v22 = vadd.f32 %v390_v30, %v1301_v31  ;;  %545 = vst [vmem:[#allocation6 + $0x28] sm:$0xff] %v533_v50  ;;  %v1320_v32 = vld [vmem:[#allocation37_spill] sm:$0xff]  ;;  %v1323_v30 = vld [vmem:[#allocation23_spill] sm:$0xff] }
  0x72   :  { %527 = vst [vmem:[#allocation7 + $0x58] sm:$0xff] %v515_v39  ;;  %v335_v7 = vadd.f32 %v321_v33, %v1308_v18  ;;  %v371_v55 = vadd.f32 %v357_v23, %v1309_v40  ;;  %v539_v52 = vsub.f32 %v728_v11, %v515_v39  ;;  %v1314_v11 = vld [vmem:[#allocation33_spill] sm:$0xff]  ;;  %v1324_v39 = vld [vmem:[#allocation44_spill] sm:$0xff] }
  0x73   :  { %v440_v37 = vadd.f32 %v426_v17, %v1302_v21  ;;  %v418_v38 = vadd.f32 %v404_v22, %v1303_v25  ;;  %548 = vst [vmem:[#allocation6 + $0x40] sm:$0xff] %v536_v6  ;;  %v1325_v6 = vld [vmem:[#allocation45_spill] sm:$0xff] }
  0x74   :  { %v349_v48 = vadd.f32 %v335_v7, %v1310_v45  ;;  %v385_v41 = vadd.f32 %v371_v55, %v1311_v8  ;;  %549 = vst [vmem:[#allocation6 + $0x48] sm:$0xff] %v537_v59 }
  0x75   :  { %v454_v2 = vadd.f32 %v440_v37, %v1304_v3  ;;  %v432_v51 = vadd.f32 %v418_v38, %v1305_v46  ;;  %550 = vst [vmem:[#allocation6 + $0x50] sm:$0xff] %v538_v10  ;;  %v1322_v3 = vld [vmem:[#allocation43_spill] sm:$0xff] }
  0x76   :  { %v363_v44 = vadd.f32 %v349_v48, %v1312_v9  ;;  %v399_v35 = vadd.f32 %v385_v41, %v1313_v13  ;;  %551 = vst [vmem:[#allocation6 + $0x58] sm:$0xff] %v539_v52 }
  0x77   :  { %v468_v58 = vadd.f32 %v454_v2, %v1307_v4  ;;  %v446_v20 = vadd.f32 %v432_v51, %v1308_v18 }
  0x78   :  { %v377_v53 = vadd.f32 %v363_v44, %v1314_v11  ;;  %v413_v60 = vadd.f32 %v399_v35, %v1315_v29 }
  0x79   :  { %v492_v54 = vadd.f32 %v468_v58, %v1309_v40  ;;  %v460_v12 = vadd.f32 %v446_v20, %v1310_v45 }
  0x7a   :  { %v391_v57 = vadd.f32 %v377_v53, %v1316_v36  ;;  %v427_v43 = vadd.f32 %v413_v60, %v1299_v56  ;;  %v1321_v56 = vld [vmem:[#allocation40_spill] sm:$0xff] }
  0x7b   :  { %v504_v42 = vmul.f32 0.04, %v492_v54  ;;  %v474_v31 = vadd.f32 %v460_v12, %v1312_v9 }
  0x7c   :  { %v405_v24 = vadd.f32 %v391_v57, %v1317_v19  ;;  %v441_v47 = vadd.f32 %v427_v43, %v1318_v63 }
  0x7d   :  { %516 = vst [vmem:[#allocation7] sm:$0xff] %v504_v42  ;;  %v498_v14 = vadd.f32 %v474_v31, %v1314_v11  ;;  %v528_v21 = vsub.f32 %v698_v0, %v504_v42 }
  0x7e   :  { %v419_v34 = vadd.f32 %v405_v24, %v1319_v62  ;;  %v455_v15 = vadd.f32 %v441_v47, %v1320_v32 }
  0x7f   :  { %v510_v25 = vmul.f32 0.04, %v498_v14  ;;  %540 = vst [vmem:[#allocation6] sm:$0xff] %v528_v21 }
  0x80   :  { %v433_v16 = vadd.f32 %v419_v34, %v1306_v27  ;;  %v469_v28 = vadd.f32 %v455_v15, %v1321_v56 }
  0x81   :  { %522 = vst [vmem:[#allocation7 + $0x30] sm:$0xff] %v510_v25  ;;  %v534_v26 = vsub.f32 %v711_v5, %v510_v25 }
  0x82   :  { %v447_v49 = vadd.f32 %v433_v16, %v1322_v3  ;;  %v493_v50 = vadd.f32 %v469_v28, %v1323_v30 }
  0x83   :  { %546 = vst [vmem:[#allocation6 + $0x30] sm:$0xff] %v534_v26 }
  0x84   :  { %v461_v0 = vadd.f32 %v447_v49, %v1324_v39  ;;  %v505_v33 = vmul.f32 0.04, %v493_v50 }
  0x86   :  { %v475_v17 = vadd.f32 %v461_v0, %v1325_v6  ;;  %517 = vst [vmem:[#allocation7 + $0x8] sm:$0xff] %v505_v33  ;;  %v529_v4 = vsub.f32 %v1300_v61, %v505_v33 }
  0x88   :  { %v499_v5 = vadd.f32 %v475_v17, %v894_v1  ;;  %541 = vst [vmem:[#allocation6 + $0x8] sm:$0xff] %v529_v4 }
  0x8a   :  { %v511_v27 = vmul.f32 0.04, %v499_v5 }
  0x8c   :  { %523 = vst [vmem:[#allocation7 + $0x38] sm:$0xff] %v511_v27  ;;  %v535_v61 = vsub.f32 %v1305_v46, %v511_v27 }
  0x8d   :  { %577 = dma.vmem_to_hbm [thread:$0]  %s570_s16, 1536, %s572_s19, [#allocation8], %s673_s14, %s673_s14, %s674_s15  }
  0x8e   :  { %547 = vst [vmem:[#allocation6 + $0x38] sm:$0xff] %v535_v61 }
  0x8f   :  { %564 = dma.vmem_to_hbm [thread:$0]  %s557_s21, 1536, %s559_s24, [#allocation5], %s673_s14, %s673_s14, %s674_s15  }
  0x90   :  { %668 = dma.done.wait [#allocation5], 1536  }
  0x91   :  { %669 = vsyncadd [#allocation5], 4294965760 }
  0x92   :  { %670 = dma.done.wait [#allocation8], 1536  }
  0x93   :  { %671 = vsyncadd [#allocation8], 4294965760 }
  0x94   :  { %586 = vsyncpa [#allocation4], 1 }
  0x95   :  { %587 = vsyncpa [#allocation5], 1 }
  0x96   :  { %588 = vsyncpa [#allocation8], 1 }

</bundles_post_ra>
